<compile_context>
chip_gen: v5e
topology: v5e:2x2
jax: 0.10.0
libtpu: 0.0.40
codegen_flags: <defaults>
</compile_context>

<pallas_src>
import jax
import jax.numpy as jnp
from jax.experimental import pallas as pl
from jax.experimental.pallas import tpu as pltpu


def _round_up(x, m):
    return (x + m - 1) // m * m


def _embedding_kernel(idx_ref, table_ref, out_ref):
    # idx_ref   : VMEM (T, 1)  int32 -- this tile's token indices
    # table_ref : VMEM (V, Dp) f32   -- full (column-padded) table, resident
    # out_ref   : VMEM (T, Dp) f32   -- lane-dense output tile (Dp % 128 == 0)
    T = idx_ref.shape[0]
    V = table_ref.shape[0]
    iota_v = jax.lax.broadcasted_iota(jnp.int32, (T, V), 1)
    onehot = (idx_ref[...] == iota_v).astype(table_ref.dtype)      # exact 0/1
    gathered = jnp.dot(
        onehot, table_ref[...],
        preferred_element_type=jnp.float32,
        precision=jax.lax.Precision.HIGHEST,   # exact gather: 1.0 * row, f32 path
    )                                                              # (T, Dp)
    out_ref[...] = gathered.astype(out_ref.dtype)


def mouse_embedding(x, emb_table, *, block_tokens=1024):
    """Equivalent of MouseEmbedding.forward: emb_table[x].

    x         : (B, S) int32 indices in [0, V)
    emb_table : (V, D) float32
    returns   : (B, S, D) float32
    """
    B, S = x.shape
    V, D = emb_table.shape
    N = B * S
    itemsize = emb_table.dtype.itemsize

    # ---- lane-dense output: pad feature dim to a multiple of 128 ----
    Dp = _round_up(D, 128)
    table = emb_table if Dp == D else jnp.pad(emb_table, ((0, 0), (0, Dp - D)))
    table_bytes = V * Dp * itemsize

    # ---- generation-aware VMEM budget ----
    try:
        vmem_cap = int(pltpu.get_tpu_info().vmem_capacity_bytes)
    except Exception:
        vmem_cap = 64 << 20           # conservative (v7x-sized) fallback
    vmem_budget = int(vmem_cap * 0.70)   # headroom for compiler internals

    # ---- token-tile size T ----
    # Per-token VMEM cost: double-buffered idx (4 B) + double-buffered output
    # row (Dp*itemsize) + in-kernel intermediates onehot(T,V) f32 + iota(T,V)
    # i32 (~8*V B).  The resident table (single-buffered) is a fixed cost.
    avail = vmem_budget - table_bytes
    per_token = 2 * 4 + 2 * Dp * itemsize + 8 * V
    t_cap = max(8, (avail // per_token) // 8 * 8) if avail > 0 else 8

    # Megacore: ensure >= 2 grid steps when there is more than one sublane of
    # tokens, so the "parallel" axis actually shards across both v7x cores.
    min_steps = 2 if N > 8 else 1
    t_from_n = _round_up((N + min_steps - 1) // min_steps, 8)
    T = max(8, min(block_tokens, t_cap, t_from_n))
    T = _round_up(T, 8)
    Np = _round_up(N, T)
    G = Np // T

    flat_idx = x.reshape(-1).astype(jnp.int32)
    if Np != N:
        flat_idx = jnp.pad(flat_idx, (0, Np - N))   # padded tokens select row 0
    idx_col = flat_idx.reshape(Np, 1)

    tile_bytes = table_bytes + 2 * (T * 4 + T * Dp * itemsize) + 8 * T * V
    vmem_limit = int(min(max(tile_bytes + (4 << 20), 32 << 20), vmem_budget))

    # Resident table is single-buffered: its block index never changes, so a
    # second pipeline buffer would only waste VMEM.
    try:
        table_spec = pl.BlockSpec((V, Dp), lambda i: (0, 0),
                                  pipeline_mode=pl.Buffered(1))
    except TypeError:
        table_spec = pl.BlockSpec((V, Dp), lambda i: (0, 0))

    out = pl.pallas_call(
        _embedding_kernel,
        out_shape=jax.ShapeDtypeStruct((Np, Dp), emb_table.dtype),
        grid_spec=pltpu.PrefetchScalarGridSpec(
            num_scalar_prefetch=0,
            grid=(G,),
            in_specs=[
                pl.BlockSpec((T, 1), lambda i: (i, 0)),   # per-tile indices
                table_spec,                               # resident table
            ],
            out_specs=pl.BlockSpec((T, Dp), lambda i: (i, 0)),
        ),
        compiler_params=pltpu.CompilerParams(
            dimension_semantics=("parallel",),   # megacore sharding on v7x
            vmem_limit_bytes=vmem_limit,
        ),
        # This call is memory/latency bound at these sizes: report the byte
        # traffic as dominant and only the one-hot compares as "flops".
        cost_estimate=pl.CostEstimate(
            flops=Np * V,
            transcendentals=0,
            bytes_accessed=Np * 4 + table_bytes + Np * Dp * itemsize,
        ),
    )(idx_col, table)

    return out[:N, :D].reshape(B, S, D)


if __name__ == "__main__":
    key = jax.random.PRNGKey(0)
    k_w, k_x = jax.random.split(key)

    # Small shapes consistent with the module: vocab (input_dim)=16, D (output_dim)=32.
    input_dim, output_dim = 16, 32
    B, S = 2, 8

    # Deterministic parameter init (nn.Embedding weight ~ N(0, 1) by default).
    emb_table = jax.random.normal(k_w, (input_dim, output_dim), dtype=jnp.float32)
    x = jax.random.randint(k_x, (B, S), 0, input_dim, dtype=jnp.int32)

    y = mouse_embedding(x, emb_table)
    y = jax.block_until_ready(y)

    # Reference check against plain JAX gather (== torch embedding semantics).
    ref = jnp.take(emb_table, x, axis=0)
    assert y.shape == (B, S, output_dim), y.shape
    assert jnp.allclose(y, ref), "Pallas embedding mismatch vs reference"

    print("KERNEL_OK")
</pallas_src>

<mosaic_0001>
module attributes {stable_mosaic.version = 11 : i64} {
  func.func @_embedding_kernel(%arg0: i32, %arg1: memref<8x1xi32, #tpu.memory_space<vmem>>, %arg2: memref<16x128xf32, #tpu.memory_space<vmem>>, %arg3: memref<8x128xf32, #tpu.memory_space<vmem>>) attributes {dimension_semantics = [#tpu.dimension_semantics<parallel>], iteration_bounds = array<i64: 2>, scalar_prefetch = 0 : i64, scratch_operands = 0 : i64, tpu.core_type = #tpu.core_type<tc>, window_params = [{transform_indices = @transform_0, window_bounds = array<i64: 8, 1>}, {pipeline_mode = #tpu.pipeline_mode<synchronous>, transform_indices = @transform_1, window_bounds = array<i64: 16, 128>}, {transform_indices = @transform_2, window_bounds = array<i64: 8, 128>}]} {
    %0 = tpu.iota {dimensions = array<i32: 1>} : vector<8x16xi32>
    %c0 = arith.constant 0 : index
    %c0_0 = arith.constant 0 : index
    %1 = vector.load %arg1[%c0, %c0_0] : memref<8x1xi32, #tpu.memory_space<vmem>>, vector<8x1xi32>
    %2 = vector.broadcast %1 : vector<8x1xi32> to vector<8x16xi32>
    %3 = arith.cmpi eq, %2, %0 : vector<8x16xi32>
    %4 = arith.extui %3 : vector<8x16xi1> to vector<8x16xi32>
    %5 = arith.sitofp %4 : vector<8x16xi32> to vector<8x16xf32>
    %c0_1 = arith.constant 0 : index
    %c0_2 = arith.constant 0 : index
    %6 = vector.load %arg2[%c0_1, %c0_2] : memref<16x128xf32, #tpu.memory_space<vmem>>, vector<16x128xf32>
    %cst = arith.constant dense<0.000000e+00> : vector<8x128xf32>
    %7 = tpu.matmul %5, %6, %cst {dimension_numbers = #tpu.dot_dimension_numbers<[1], [0], [0], [1], [0, 0, 1, 1], [], []>, precision = #tpu.contract_precision<fp32>} : vector<8x16xf32>, vector<16x128xf32>, vector<8x128xf32> -> vector<8x128xf32>
    %c0_3 = arith.constant 0 : index
    %c0_4 = arith.constant 0 : index
    %8 = vector.load %arg3[%c0_3, %c0_4] : memref<8x128xf32, #tpu.memory_space<vmem>>, vector<8x128xf32>
    tpu.vector_store %arg3[%c0_3, %c0_4], %7 {strides = array<i32>} : memref<8x128xf32, #tpu.memory_space<vmem>>, vector<8x128xf32>,
    return
  }
  func.func @transform_0(%arg0: i32) -> (i32, i32) {
    %c0_i32 = arith.constant 0 : i32
    %c0_i32_0 = arith.constant 0 : i32
    return %arg0, %c0_i32 : i32, i32
  }
  func.func @transform_1(%arg0: i32) -> (i32, i32) {
    %c0_i32 = arith.constant 0 : i32
    %c0_i32_0 = arith.constant 0 : i32
    %c0_i32_1 = arith.constant 0 : i32
    return %c0_i32, %c0_i32_0 : i32, i32
  }
  func.func @transform_2(%arg0: i32) -> (i32, i32) {
    %c0_i32 = arith.constant 0 : i32
    %c0_i32_0 = arith.constant 0 : i32
    return %arg0, %c0_i32 : i32, i32
  }
}

</mosaic_0001>

<bundles_post_ra>
// kernel: tpu_custom_call.1
= control target key start
LH: loop header
LB: loop body
LE: loop exit
PB: predicated region body
PF: predicated region fallthrough
CT: control target
= control target key end

     0   :  { %7 = vsyncpa [#allocation3], 0  ;;  %s617_s0 = inlined_call_operand.vmem [shape: s32[16,1], index: 0, kind: input, shape index: {}]   ;;  %s618_s1 = inlined_call_operand.vmem [shape: f32[16,128], index: 1, kind: input, shape index: {}]   ;;  %s619_s2 = inlined_call_operand.hbm [shape: f32[16,128], index: 2, kind: output, shape index: {}]  }
   0x1   :  { %9 = vsyncpa [#allocation3 + $0x1], 0  ;;  %s526_s9 = smov 0   ;;  %s528_s10 = smov 0  }
   0x2   :  { %s530_s11 = smov 0   ;;  %s532_s12 = smov 0  }
   0x3 LB: > { %s547_s13 = sadd.s32 4294967295, %s507_s12   ;;  %s389_s14 = sadd.s32 4294967294, %s507_s12   ;;  %s507_s12 = sphi %s532_s12, %s625_s12   ;;  %s503_s11 = sphi %s530_s11, %s624_s11   ;;  %s499_s10 = sphi %s528_s10, %s623_s10   ;;  %s495_s9 = sphi %s526_s9, %s622_s9  }
   0x4   : > { %s551_s15 = sadd.s32 1, %s507_s12   ;;  %s69_s16 = sadd.s32 1, %s503_s11 }
   0x5   : > { %s66_s17 = ssub.s32 %s507_s12, %s551_s15  ;;  %p79_p0 = scmp.ne.s32.totalorder %s503_s11, %s499_s10 }
   0x6   : > { %p67_p1 = scmp.eq.s32.totalorder %s66_s17, 0  ;;  %p80_p2 = scmp.eq.s32.totalorder %s547_s13, 1 }
   0x7   : > { %p85_p3 = scmp.ne.s32.totalorder %s499_s10, %s495_s9  ;;  %p86_p4 = scmp.eq.s32.totalorder %s389_s14, 1 }
   0x8   : > { %s562_s18 = scalar_select %p67_p1, %s503_s11, %s69_s16  }
   0x9   : > { %p564_p5 = por %p80_p2, %p79_p0  ;;  %p568_p6 = por %p86_p4, %p85_p3 }
   0xa   : > { %p392_p7 = scmp.ge.s32.totalorder %s507_s12, 1  ;;  %p114_p8 = scmp.lt.s32.totalorder %s507_s12, 3 }
   0xc   : > { %p115_p9 = pnand %p392_p7, %p114_p8 }
   0xd   : > { %p135_p10 = scmp.lt.s32.totalorder (!%p115_p9), %s547_s13, 1  ;;  %s132_s30 = sand.u32 (!%p115_p9), 1, %s499_s10  }
   0xe   : > { %118 = sbr.rel (%p115_p9) target bundleno = 291 (0x123), region = 28  ;;  %s393_s3 = sshll.u32 (!%p115_p9), %s132_s30, 3 }
   0xf   : > { %s400_s4 = sshll.u32 (!%p115_p9), %s547_s13, 3  ;;  %s134_s8 = scalar_lea.vmem (!%p115_p9), [#allocation2], %s393_s3 }
  0x10   : > { %s325_s7 = scalar_lea.hbm (!%p115_p9), %s619_s2, %s400_s4  ;;  %s327_s14 = sshll.u32 (!%p115_p9), %s134_s8, 4  ;;  %s328_s14 = int_to_ptr.vmem [resolvable:$true] %s327_s14 }
  0x11   : > { %s329_s16 = sshll.u32 (!%p115_p9), %s325_s7, 4  ;;  %s315_s17 = scalar_lea.sflag (!%p115_p9), [#allocation3], %s132_s30  ;;  %s330_s16 = int_to_ptr.hbm [resolvable:$true] %s329_s16 }
  0x13   : > { %v149_v0 = vld [vmem:[%s618_s1 + $0x8] sm:$0xff]  ;;  %v509_v1 = vmov 0   ;;  %s136_s23 = scalar_select %p135_p10, %s547_s13, 1  ;;  %v148_v8 = vld [vmem:[%s618_s1] sm:$0xff]  ;;  %v139_v14 = vlaneseq  ;;  %vm150_vm0 = vcmask 130048   ;;  %v510_v17 = vmov 0.0  }
  0x14   : > { %444 = vset.pattern.permute.xlu0 %v509_v1  ;;  %v168_v2 = vand.u32 4294901760, %v149_v0  ;;  %v170_v9 = vand.u32 4294901760, %v148_v8  ;;  %s459_s13 = sshra.s32 %s330_s16, 4  ;;  %s460_s13 = int_to_ptr.hbm [resolvable:$true] %s459_s13 }
  0x15   : > { %s394_s24 = sshll.u32 %s136_s23, 3  ;;  %v140_v15 = vand.u32 127, %v139_v14  ;;  %s461_s21 = scalar_lea.hbm %s460_s13, 8 }
  0x16   : > { %v196_v3 = vsub.f32 %v149_v0, %v168_v2  ;;  %253 = vmatpush.msra.mxu3 %v168_v2  ;;  %169 = vmatpush.msra.mxu0 %v168_v2  ;;  %s138_s27 = scalar_lea.vmem %s617_s0, %s394_s24  ;;  %v202_v10 = vsub.f32 %v148_v8, %v170_v9  ;;  %p462_p11 = scmp.ne.s32.totalorder %s460_s13, %s461_s21 }
  0x17   : > { %v141_v5 = vld [vmem:[%s138_s27] sm:$0xff]  ;;  %s465_s24 = scalar_lea.hbm %s619_s2, 16  ;;  %p466_p0 = scmp.lt.s32.totalorder %s460_s13, %s619_s2 }
  0x18   : > { %v197_v4 = vand.u32 4294901760, %v196_v3  ;;  %228 = vmatpush.msra.mxu2 %v196_v3  ;;  %143 = vperm.xlu0 %444, %v141_v5   ;;  %v203_v11 = vand.u32 4294901760, %v202_v10  ;;  %p463_p12 = pnand %p462_p11, %p564_p5  ;;  %p467_p1 = scmp.lt.s32.totalorder %s465_s24, %s461_s21 }
  0x19   : > { %255 = vmatpush.msra.mxu3 %v170_v9  ;;  %171 = vmatpush.msra.mxu0 %v170_v9 }
  0x1a   : > { %v198_v6 = vsub.f32 %v196_v3, %v197_v4  ;;  %231 = vmatpush.msra.mxu2 %v202_v10  ;;  %v204_v12 = vsub.f32 %v202_v10, %v203_v11  ;;  %p464_p13 = pneg %p463_p12  ;;  %p468_p2 = por %p467_p1, %p466_p0 }
  0x1b   : > { %280 = vmatpush.msrb.mxu0 %v197_v4 }
  0x1c   : > { %v199_v7 = vand.u32 4294901760, %v198_v6  ;;  %v205_v13 = vand.u32 4294901760, %v204_v12  ;;  %p469_p3 = pnand %p468_p2, %p464_p13 }
  0x1d   : > { %284 = vmatpush.msrb.mxu0 %v203_v11 }
  0x1e   : > { %200 = vmatpush.msra.mxu1 %v199_v7 }
  0x20   : > { %206 = vmatpush.msra.mxu1 %v205_v13 }
  0x22   : > { %305 = vmatpush.msrb.mxu1 %v168_v2 }
  0x24   : > { %307 = vmatpush.msrb.mxu1 %v170_v9 }
  0x8a   : > { %v144_v16 = vpop.permute.xlu0 %143 }
  0x8b   : > { %vm145_vm1 = vcmp.eq.s32.totalorder %v144_v16, %v140_v15 }
  0x8c   : > { %v395_v18 = vsel %vm145_vm1, 1.0, %v510_v17 }
  0x8d   : > { %396 = vmatmul.msk.f32.vlgmr.msra.gmra.mxu1 %vm150_vm0, %v395_v18  ;;  %v152_v19 = vsel %vm150_vm0, %v395_v18, 0 }
  0x8e   : > { %v173_v20 = vsub.f32 %v152_v19, %v152_v19 }
  0x90   : > { %234 = vmatmul.f32.vlgmr.msra.gmra.mxu2 %v173_v20  ;;  %v174_v21 = vand.u32 4294901760, %v173_v20 }
  0x92   : > { %259 = vmatmul.f32.vlgmr.msra.gmra.mxu3 %v174_v21  ;;  %v175_v22 = vsub.f32 %v173_v20, %v174_v21 }
  0x94   : > { %v176_v23 = vand.u32 4294901760, %v175_v22 }
  0x95   : > { %398 = vmatmul.msk.f32.vlgmr.msrb.gmra.mxu1 %vm150_vm0, %v395_v18 }
  0x96   : > { %177 = vmatmul.f32.vlgmr.msra.gmra.mxu0 %v176_v23 }
  0x9e   : > { %397 = vmatmul.msk.f32.vlgmr.msrb.gmra.mxu0 %vm150_vm0, %v395_v18 }
 0x10a   : > { %v209_v24 = vpop.f32.mrf.mxu1 }
 0x112   : > { %v310_v33 = vpop.f32.mrf.mxu1 }
 0x113   : > { %v178_v25 = vpop.f32.mrf.mxu0  ;;  %v235_v27 = vpop.f32.mrf.mxu2 }
 0x114   : > { %v210_v26 = vadd.f32 %v209_v24, %v178_v25 }
 0x115   : > { %v260_v29 = vpop.f32.mrf.mxu3 }
 0x116   : > { %v236_v28 = vadd.f32 %v235_v27, %v210_v26 }
 0x118   : > { %v261_v30 = vadd.f32 %v260_v29, %v236_v28 }
 0x11b   : > { %v287_v31 = vpop.f32.mrf.mxu0 }
 0x11c   : > { %v288_v32 = vadd.f32 %v287_v31, %v261_v30 }
 0x11e   : > { %v311_v34 = vadd.f32 %v310_v33, %v288_v32 }
 0x120   : > { %313 = vst [vmem:[%s134_s8] sm:$0xff] %v311_v34 }
 0x121   : > { %472 = shalt.err (!%p469_p3)
}
 0x122   : > { %403 = dma.vmem_to_hbm [thread:$0]  (%p564_p5), %s328_s14, 128, %s330_s16, %s315_s17  }
 0x123 PF: > { %p409_p4 = scmp.ge.s32.totalorder %s507_s12, 2  ;;  %s341_s27 = sand.u32 1, %s495_s9  }
 0x124   : > { %s342_s28 = scalar_lea.sflag [#allocation3], %s341_s27 }
 0x125   : > { %p406_p7 = pnand %p409_p4, %p568_p6 }
 0x127   : > { %p407_p8 = pneg %p406_p7 }
 0x129   : > { %490 = dma.done.wait (%p407_p8), %s342_s28, 128  }
 0x12a   : > { %492 = vsyncadd (%p407_p8), %s342_s28, 4294967168  ;;  %p12_p9 = scmp.ge.s32.totalorder %s551_s15, 4   ;;  %s622_s9 = smov %s499_s10 }
 0x12b   : > { %s623_s10 = smov %s503_s11  ;;  %s624_s11 = smov %s562_s18 }
 0x12c   : > { %s625_s12 = smov %s551_s15  ;;  %14 = sbr.rel (!%p12_p9) target bundleno = 3 (0x3), region = 63 }
 0x131   :  { %348 = vsyncpa [#allocation3], 1 }
 0x132   :  { %350 = vsyncpa [#allocation3 + $0x1], 1 }

</bundles_post_ra>
